<compile_context>
chip_gen: v7x
topology: tpu7x:2x2x1
jax: 0.10.0
libtpu: 0.0.40
codegen_flags: <defaults>
</compile_context>

<pallas_src>
import functools

import jax
import jax.numpy as jnp
from jax.experimental import pallas as pl
from jax.experimental.pallas import tpu as pltpu


def _round_up(a: int, b: int) -> int:
    return (a + b - 1) // b * b


def spn_kernel(b_ref, x_ref, w12t_ref, w2bt_ref, o_ref, *, hpad: int, ostore: int):
    # b_ref lives in SMEM: b_ref[0] == biases[0], b_ref[1] == biases[1]
    b0 = b_ref[0]
    b1 = b_ref[1]
    x = x_ref[...]                                     # (bm, X)

    # One fused lane-dense matmul over the streamed operand x:
    #   xw[:, :hpad]  = x @ W1^T        (zero-padded to hpad lanes)
    #   xw[:, hpad:]  = x @ W2[:, :X]^T (zero-padded to opad lanes)
    xw = jnp.dot(x, w12t_ref[...], preferred_element_type=jnp.float32)

    # Hidden block: relu(x @ W1^T + biases[0]); padded lanes become relu(b0) but the
    # matching rows of W2b^T are zero, so they contribute nothing downstream.
    h = jnp.maximum(xw[:, :hpad] + b0, 0.0)            # (bm, hpad)

    # Output block: x @ W2[:, :X]^T + h @ W2[:, X:]^T + biases[1].  Computed at the
    # full 128-lane MXU width, but only the first `ostore` lanes are written back to
    # HBM (compact writeback; padded lanes hold b1 garbage and are discarded).
    y = (xw[:, hpad:]
         + jnp.dot(h, w2bt_ref[...], preferred_element_type=jnp.float32)
         + b1)                                          # (bm, opad)
    o_ref[...] = y[:, :ostore].astype(o_ref.dtype)


def spn_prepare_params(w1, w2, biases, *, lane: int = 128):
    """One-time parameter preparation (transpose / fuse / pad). Call once, reuse."""
    H, X = w1.shape          # H = total_nodes - output_nodes
    O = w2.shape[0]          # output_nodes
    assert w2.shape[1] == X + H, "W2 must act on concat([x, h])"

    hpad = _round_up(max(H, 1), lane)
    opad = _round_up(max(O, 1), lane)
    ostore = _round_up(max(O, 1), 8)      # compact HBM output width (sublane multiple)

    # Fused weight for the x-matmul: (X, hpad + opad), split point on a lane boundary.
    w12t = jnp.zeros((X, hpad + opad), jnp.float32)
    w12t = w12t.at[:, :H].set(w1.T.astype(jnp.float32))
    w12t = w12t.at[:, hpad:hpad + O].set(w2[:, :X].T.astype(jnp.float32))

    # Hidden-block weight, zero-padded: (hpad, opad). Zero padded rows neutralize the
    # garbage padded hidden lanes.
    w2bt = jnp.zeros((hpad, opad), jnp.float32)
    w2bt = w2bt.at[:H, :O].set(w2[:, X:].T.astype(jnp.float32))

    # Only biases[0], biases[1] participate in forward (matches the PyTorch code).
    b2 = biases[:2].astype(jnp.float32)

    return dict(w12t=w12t, w2bt=w2bt, b2=b2,
                X=X, H=H, O=O, hpad=hpad, opad=opad, ostore=ostore)


def spn_forward(x, params, *, bm: int = 2048):
    """Pallas SPN forward for the min_blocks / total_nodes > output_nodes case.

    `params` must come from spn_prepare_params (closed over under jit so the shape
    metadata stays static).
    """
    B, X = x.shape
    assert X == params["X"]
    hpad, opad, ostore, O = (params["hpad"], params["opad"],
                             params["ostore"], params["O"])

    # Balanced batch tiling:
    #   * big tiles (<= bm rows) so the per-grid-step overhead is amortized,
    #   * tiles balanced across the grid so ragged batches pad <= 7*nt rows (and the
    #     jnp.pad copy of x is skipped whenever the batch already fits the tile grid),
    #   * >= 2 grid steps for mid/large batches so a v7x megacore can shard the batch
    #     axis across its two TensorCores.
    nt = max(1, pl.cdiv(B, bm))
    if B >= 1024:
        nt = max(nt, 2)
    bm_eff = _round_up(pl.cdiv(B, nt), 8)
    bpad = nt * bm_eff
    xp = x if bpad == B else jnp.pad(x, ((0, bpad - B), (0, 0)))

    kernel = functools.partial(spn_kernel, hpad=hpad, ostore=ostore)

    out = pl.pallas_call(
        kernel,
        # Compact output: (bpad, ostore) with ostore = round_up(O, 8); the block's
        # last dim equals the full array dim, which is a legal TPU block shape and
        # keeps the HBM slab contiguous.
        out_shape=jax.ShapeDtypeStruct((bpad, ostore), x.dtype),
        grid_spec=pl.GridSpec(
            grid=(nt,),
            in_specs=[
                pl.BlockSpec(memory_space=pltpu.MemorySpace.SMEM),     # biases (2,)
                pl.BlockSpec((bm_eff, X), lambda i: (i, 0)),           # x tile
                pl.BlockSpec((X, hpad + opad), lambda i: (0, 0)),      # fused W12^T
                pl.BlockSpec((hpad, opad), lambda i: (0, 0)),          # W2b^T
            ],
            out_specs=pl.BlockSpec((bm_eff, ostore), lambda i: (i, 0)),
        ),
        compiler_params=pltpu.CompilerParams(
            dimension_semantics=("parallel",)),
    )(params["b2"], xp, params["w12t"], params["w2bt"])

    # Strip batch padding and the (at most 7) padded output columns -- tiny now.
    return out[:B, :O]


def spn_ref(x, w1, w2, biases):
    """Plain-JAX reference matching SPNAutoGrad.forward (2-block case)."""
    h = jnp.maximum(x @ w1.T + biases[0], 0.0)
    inp = jnp.concatenate([x, h], axis=1)
    return inp @ w2.T + biases[1]


# TODO(synk): only the min_blocks / total_nodes > output_nodes branch (two weight
# blocks) is implemented; the per-node-weight variant (n cascaded 1-row matmuls) and
# the n == output_nodes single-block branch have no efficient single-kernel mapping
# here and are not translated.  Backward pass (SPNAutoGrad.backward) is not translated.


if __name__ == "__main__":
    # Small config consistent with SPN.__init__: input_features=16, total_nodes=12,
    # output_nodes=4, use_min_weights=True.
    B, X, n, O = 8, 16, 12, 4
    H = n - O

    key = jax.random.PRNGKey(0)
    kx, k1, k2, kb, kx2 = jax.random.split(key, 5)

    x = jax.random.normal(kx, (B, X), dtype=jnp.float32)
    # Deterministic parameter init matching SPN.get_weights (min_blocks=True):
    w1 = jax.random.normal(k1, (H, X), dtype=jnp.float32) * jnp.sqrt(2.0 / X)
    w2 = jax.random.normal(k2, (O, X + H), dtype=jnp.float32) * jnp.sqrt(2.0 / (X + H))
    biases = jax.random.uniform(kb, (n,), dtype=jnp.float32, minval=0.0, maxval=1.0)

    # Prepare (transpose / fuse / pad) the weights ONCE; jit the forward over x only.
    params = spn_prepare_params(w1, w2, biases)
    fwd = jax.jit(lambda xx: spn_forward(xx, params))

    out = jax.block_until_ready(fwd(x))
    ref = spn_ref(x, w1, w2, biases)
    assert out.shape == (B, O)
    assert jnp.allclose(out, ref, atol=1e-5, rtol=1e-5)

    # Second small case with a ragged batch (exercises the balanced-tile padding path).
    B2 = 20
    x2 = jax.random.normal(kx2, (B2, X), dtype=jnp.float32)
    out2 = jax.block_until_ready(jax.jit(lambda xx: spn_forward(xx, params))(x2))
    ref2 = spn_ref(x2, w1, w2, biases)
    assert out2.shape == (B2, O)
    assert jnp.allclose(out2, ref2, atol=1e-5, rtol=1e-5)

    print("KERNEL_OK")
</pallas_src>

<mosaic_0001>
module attributes {stable_mosaic.version = 11 : i64} {
  func.func @spn_kernel(%arg0: i32, %arg1: memref<2xf32, #tpu.memory_space<smem>>, %arg2: memref<8x16xf32, #tpu.memory_space<vmem>>, %arg3: memref<16x256xf32, #tpu.memory_space<vmem>>, %arg4: memref<128x128xf32, #tpu.memory_space<vmem>>, %arg5: memref<8x8xf32, #tpu.memory_space<vmem>>) attributes {dimension_semantics = [#tpu.dimension_semantics<parallel>], iteration_bounds = array<i64: 1>, scalar_prefetch = 0 : i64, scratch_operands = 0 : i64, tpu.core_type = #tpu.core_type<tc>, window_params = [{transform_indices = @transform_0, window_bounds = array<i64: 2>}, {transform_indices = @transform_1, window_bounds = array<i64: 8, 16>}, {pipeline_mode = #tpu.pipeline_mode<synchronous>, transform_indices = @transform_2, window_bounds = array<i64: 16, 256>}, {pipeline_mode = #tpu.pipeline_mode<synchronous>, transform_indices = @transform_3, window_bounds = array<i64: 128, 128>}, {transform_indices = @transform_4, window_bounds = array<i64: 8, 8>}]} {
    %c0 = arith.constant 0 : index
    %0 = memref.load %arg1[%c0] : memref<2xf32, #tpu.memory_space<smem>>
    %c1 = arith.constant 1 : index
    %1 = memref.load %arg1[%c1] : memref<2xf32, #tpu.memory_space<smem>>
    %c0_0 = arith.constant 0 : index
    %c0_1 = arith.constant 0 : index
    %2 = vector.load %arg2[%c0_0, %c0_1] : memref<8x16xf32, #tpu.memory_space<vmem>>, vector<8x16xf32>
    %c0_2 = arith.constant 0 : index
    %c0_3 = arith.constant 0 : index
    %3 = vector.load %arg3[%c0_2, %c0_3] : memref<16x256xf32, #tpu.memory_space<vmem>>, vector<16x256xf32>
    %cst = arith.constant dense<0.000000e+00> : vector<8x256xf32>
    %4 = tpu.matmul %2, %3, %cst {dimension_numbers = #tpu.dot_dimension_numbers<[1], [0], [0], [1], [0, 0, 1, 1], [], []>} : vector<8x16xf32>, vector<16x256xf32>, vector<8x256xf32> -> vector<8x256xf32>
    %5 = vector.extract_strided_slice %4 {offsets = [0, 0], sizes = [8, 128], strides = [1, 1]} : vector<8x256xf32> to vector<8x128xf32>
    %6 = vector.broadcast %0 : f32 to vector<8x128xf32>
    %7 = arith.addf %5, %6 : vector<8x128xf32>
    %cst_4 = arith.constant 0.000000e+00 : f32
    %8 = vector.broadcast %cst_4 : f32 to vector<8x128xf32>
    %9 = arith.maximumf %7, %8 : vector<8x128xf32>
    %10 = vector.extract_strided_slice %4 {offsets = [0, 128], sizes = [8, 128], strides = [1, 1]} : vector<8x256xf32> to vector<8x128xf32>
    %c0_5 = arith.constant 0 : index
    %c0_6 = arith.constant 0 : index
    %11 = vector.load %arg4[%c0_5, %c0_6] : memref<128x128xf32, #tpu.memory_space<vmem>>, vector<128x128xf32>
    %cst_7 = arith.constant dense<0.000000e+00> : vector<8x128xf32>
    %12 = tpu.matmul %9, %11, %cst_7 {dimension_numbers = #tpu.dot_dimension_numbers<[1], [0], [0], [1], [0, 0, 1, 1], [], []>} : vector<8x128xf32>, vector<128x128xf32>, vector<8x128xf32> -> vector<8x128xf32>
    %13 = arith.addf %10, %12 : vector<8x128xf32>
    %14 = vector.broadcast %1 : f32 to vector<8x128xf32>
    %15 = arith.addf %13, %14 : vector<8x128xf32>
    %16 = vector.extract_strided_slice %15 {offsets = [0, 0], sizes = [8, 8], strides = [1, 1]} : vector<8x128xf32> to vector<8x8xf32>
    %c0_8 = arith.constant 0 : index
    %c0_9 = arith.constant 0 : index
    %17 = vector.load %arg5[%c0_8, %c0_9] : memref<8x8xf32, #tpu.memory_space<vmem>>, vector<8x8xf32>
    tpu.vector_store %arg5[%c0_8, %c0_9], %16 {strides = array<i32>} : memref<8x8xf32, #tpu.memory_space<vmem>>, vector<8x8xf32>,
    return
  }
  func.func @transform_0(%arg0: i32) -> i32 {
    %c0_i32 = arith.constant 0 : i32
    %c0_i32_0 = arith.constant 0 : i32
    return %c0_i32 : i32
  }
  func.func @transform_1(%arg0: i32) -> (i32, i32) {
    %c0_i32 = arith.constant 0 : i32
    %c0_i32_0 = arith.constant 0 : i32
    return %arg0, %c0_i32 : i32, i32
  }
  func.func @transform_2(%arg0: i32) -> (i32, i32) {
    %c0_i32 = arith.constant 0 : i32
    %c0_i32_0 = arith.constant 0 : i32
    %c0_i32_1 = arith.constant 0 : i32
    return %c0_i32, %c0_i32_0 : i32, i32
  }
  func.func @transform_3(%arg0: i32) -> (i32, i32) {
    %c0_i32 = arith.constant 0 : i32
    %c0_i32_0 = arith.constant 0 : i32
    %c0_i32_1 = arith.constant 0 : i32
    return %c0_i32, %c0_i32_0 : i32, i32
  }
  func.func @transform_4(%arg0: i32) -> (i32, i32) {
    %c0_i32 = arith.constant 0 : i32
    %c0_i32_0 = arith.constant 0 : i32
    return %arg0, %c0_i32 : i32, i32
  }
}

</mosaic_0001>

<bundles_post_ra>
// kernel: _lambda_.1
= control target key start
LH: loop header
LB: loop body
LE: loop exit
PB: predicated region body
PF: predicated region fallthrough
CT: control target
= control target key end

     0   :  { %9 = vsyncpa [#allocation4], 0  ;;  %s514_s0 = inlined_call_operand.vmem [shape: f32[2], index: 0, kind: input, shape index: {}]   ;;  %s515_s1 = inlined_call_operand.hbm [shape: f32[8,16], index: 1, kind: input, shape index: {}]   ;;  %s516_s2 = inlined_call_operand.hbm [shape: f32[16,256], index: 2, kind: input, shape index: {}]   ;;  %s517_s3 = inlined_call_operand.hbm [shape: f32[128,128], index: 3, kind: input, shape index: {}]   ;;  %s518_s4 = inlined_call_operand.vmem [shape: f32[8,8], index: 4, kind: output, shape index: {}]  }
   0x1   :  { %10 = vsyncpa [#allocation3], 0 }
   0x2   :  { %11 = vsyncpa [#allocation7], 0  ;;  %s429_s15 = smov [#allocation6]   ;;  %s18_s19 = sshll.u32 %s514_s0, 4  ;;  %s19_s19 = int_to_ptr.vmem [resolvable:$true] %s18_s19 }
   0x3   :  { %s37_s16 = sshll.u32 %s429_s15, 4  ;;  %s345_s22 = scalar_lea.hbm %s516_s2, 512  ;;  %s38_s16 = int_to_ptr.vmem [resolvable:$true] %s37_s16 }
   0x4   :  { %p346_p0 = scmp.ne.s32.totalorder %s516_s2, %s345_s22  ;;  %p349_p1 = scmp.lt.u32.totalorder %s345_s22, %s516_s2 }
   0x6   :  { %p351_p2 = pnand %p349_p1, %p346_p0 }
   0x8   :  { %354 = shalt.err (!%p351_p2)
}
   0x9   :  { %s355_s27 = scalar_lea.vmem %s38_s16, 512  ;;  %p360_p4 = scmp.lt.s32.totalorder %s38_s16, %s38_s16 }
   0xa   :  { %p356_p3 = scmp.ne.s32.totalorder %s38_s16, %s355_s27  ;;  %p361_p5 = scmp.lt.s32.totalorder %s355_s27, %s355_s27 }
   0xc   :  { %p362_p6 = por %p361_p5, %p360_p4 }
   0xe   :  { %p363_p7 = pnand %p362_p6, %p356_p3 }
  0x10   :  { %366 = shalt.err (!%p363_p7)
}
  0x11   :  { %s430_s0 = smov 256   ;;  %s431_s28 = smov 16  }
  0x12   :  { %43 = dma.hbm_to_vmem [thread:$0]  %s516_s2, 512, %s38_s16, [#allocation7], %s430_s0, %s430_s0, %s431_s28  }
  0x13   :  { %s367_s5 = scalar_lea.vmem %s19_s19, 16  ;;  %p372_p9 = scmp.lt.s32.totalorder %s19_s19, %s19_s19 }
  0x14   :  { %p368_p8 = scmp.ne.s32.totalorder %s19_s19, %s367_s5  ;;  %p373_p10 = scmp.lt.s32.totalorder %s367_s5, %s367_s5 }
  0x16   :  { %p374_p11 = por %p373_p10, %p372_p9 }
  0x18   :  { %p375_p12 = pnand %p374_p11, %p368_p8 }
  0x1a   :  { %378 = shalt.err (!%p375_p12)
}
  0x1b   :  { %s432_s6 = smov [#allocation2]   ;;  %s433_s7 = smov [#allocation5]  }
  0x1c   :  { %21 = dma.vmem_to_smem %s19_s19, 16, %s432_s6, [#allocation4]  }
  0x1d   :  { %s28_s8 = sshll.u32 %s433_s7, 4  ;;  %s434_s9 = smov [#allocation8]   ;;  %s29_s8 = int_to_ptr.vmem [resolvable:$true] %s28_s8 }
  0x1e   :  { %s49_s10 = sshll.u32 %s434_s9, 4  ;;  %s379_s2 = scalar_lea.hbm %s515_s1, 128  ;;  %s480_s10 = int_to_ptr.vmem [resolvable:$true] %s49_s10 }
  0x1f   :  { %p380_p13 = scmp.ne.s32.totalorder %s515_s1, %s379_s2  ;;  %p383_p0 = scmp.lt.u32.totalorder %s379_s2, %s515_s1 }
  0x21   :  { %p385_p1 = pnand %p383_p0, %p380_p13 }
  0x23   :  { %388 = shalt.err (!%p385_p1)
}
  0x24   :  { %s389_s17 = scalar_lea.vmem %s29_s8, 128  ;;  %p394_p3 = scmp.lt.s32.totalorder %s29_s8, %s29_s8 }
  0x25   :  { %p390_p2 = scmp.ne.s32.totalorder %s29_s8, %s389_s17  ;;  %p395_p4 = scmp.lt.s32.totalorder %s389_s17, %s389_s17 }
  0x27   :  { %p396_p5 = por %p395_p4, %p394_p3 }
  0x29   :  { %p397_p6 = pnand %p396_p5, %p390_p2 }
  0x2b   :  { %400 = shalt.err (!%p397_p6)
}
  0x2c   :  { %31 = dma.hbm_to_vmem [thread:$0]  %s515_s1, 128, %s29_s8, [#allocation3]  }
  0x2d   :  { %s401_s22 = scalar_lea.hbm %s517_s3, 2048 }
  0x2e   :  { %p402_p7 = scmp.ne.s32.totalorder %s517_s3, %s401_s22  ;;  %p405_p8 = scmp.lt.u32.totalorder %s401_s22, %s517_s3 }
  0x30   :  { %p407_p9 = pnand %p405_p8, %p402_p7 }
  0x32   :  { %410 = shalt.err (!%p407_p9)
}
  0x33   :  { %s411_s27 = scalar_lea.vmem %s480_s10, 2048  ;;  %p416_p11 = scmp.lt.s32.totalorder %s480_s10, %s480_s10 }
  0x34   :  { %p412_p10 = scmp.ne.s32.totalorder %s480_s10, %s411_s27  ;;  %p417_p12 = scmp.lt.s32.totalorder %s411_s27, %s411_s27 }
  0x36   :  { %p418_p13 = por %p417_p12, %p416_p11 }
  0x38   :  { %p419_p0 = pnand %p418_p13, %p412_p10 }
  0x3a   :  { %422 = shalt.err (!%p419_p0)
}
  0x3b   :  { %s435_s1 = smov 128   ;;  %s436_s0 = smov 8  }
  0x3c   :  { %55 = dma.hbm_to_vmem [thread:$0]  %s517_s3, 2048, %s480_s10, [#allocation7], %s435_s1, %s435_s1, %s436_s0  }
  0x3d   :  { %423 = dma.done.wait [#allocation4], 16  }
  0x3e   :  { %424 = vsyncadd [#allocation4], 4294967280 }
  0x3f   :  { %425 = dma.done.wait [#allocation3], 128  }
  0x40   :  { %426 = vsyncadd [#allocation3], 4294967168 }
  0x41   :  { %427 = dma.done.wait [#allocation7], 2560  }
  0x42   :  { %428 = vsyncadd [#allocation7], 4294964736 }
  0x43   :  { %68 = sfence }
  0x44   :  { %v73_v0 = vld [vmem:[#allocation6 + $0x8] sm:$0xff]  ;;  %v75_v1 = vld [vmem:[#allocation6 + $0x18] sm:$0xff]  ;;  %v72_v2 = vld [vmem:[#allocation6] sm:$0xff]  ;;  %v437_v5 = vmov 0.0   ;;  %v438_v6 = vmov 0.0|0.0   ;;  %vm76_vm0 = vcmask 130048  }
  0x45   :  { %v306_v3 = vpack.c.bf16 %v75_v1, %v73_v0  ;;  %v74_v4 = vld [vmem:[#allocation6 + $0x10] sm:$0xff]  ;;  %144 = vmatprep.mubr.f32.mxu0 %v437_v5  ;;  %310 = vmatprep.subr.bf16.mxu1 %v438_v6  ;;  %v154_v7 = vld [vmem:[#allocation8] sm:$0xff]  ;;  %v155_v9 = vld [vmem:[#allocation8 + $0x8] sm:$0xff]  ;;  %vm439_vm1 = vmmov 0   ;;  %s69_s3 = sld [smem:[#allocation2]]  ;;  %s252_s30 = sld [smem:[#allocation2 + $0x1]] }
  0x46   :  { %v308_v8 = vpack.c.bf16 %v74_v4, %v72_v2  ;;  %v156_v10 = vld [vmem:[#allocation8 + $0x10] sm:$0xff]  ;;  %v157_v11 = vld [vmem:[#allocation8 + $0x18] sm:$0xff]  ;;  %v311_v12 = vpack.c.bf16 %v155_v9, %v154_v7  ;;  %v158_v15 = vld [vmem:[#allocation8 + $0x20] sm:$0xff]  ;;  %303 = vmatprep.mubr.msk.f32.mxu1 %vm439_vm1, %v437_v5  ;;  %vm243_vm2 = vcmask 64512  }
  0x47   :  { %307 = vmatprep.subr.bf16.mxu0 %v306_v3  ;;  %v71_v13 = vld [vmem:[#allocation5] sm:$0xff]  ;;  %v314_v14 = vpack.c.bf16 %v157_v11, %v156_v10  ;;  %v159_v16 = vld [vmem:[#allocation8 + $0x28] sm:$0xff]  ;;  %v160_v18 = vld [vmem:[#allocation8 + $0x30] sm:$0xff] }
  0x48   :  { %309 = vmatpush1.bf16.msra.mxu0 %v308_v8  ;;  %312 = vmatpush3.bf16.msra.mxu1 %v311_v12  ;;  %v317_v17 = vpack.c.bf16 %v159_v16, %v158_v15  ;;  %v161_v19 = vld [vmem:[#allocation8 + $0x38] sm:$0xff]  ;;  %v162_v21 = vld [vmem:[#allocation8 + $0x40] sm:$0xff]  ;;  %v163_v22 = vld [vmem:[#allocation8 + $0x48] sm:$0xff] }
  0x49   :  { %313 = vmatprep.subr.bf16.mxu1 %v438_v6  ;;  %v320_v20 = vpack.c.bf16 %v161_v19, %v160_v18  ;;  %v323_v23 = vpack.c.bf16 %v163_v22, %v162_v21  ;;  %v164_v24 = vld [vmem:[#allocation8 + $0x50] sm:$0xff]  ;;  %v165_v25 = vld [vmem:[#allocation8 + $0x58] sm:$0xff]  ;;  %v166_v27 = vld [vmem:[#allocation8 + $0x60] sm:$0xff] }
  0x4a   :  { %v326_v26 = vpack.c.bf16 %v165_v25, %v164_v24  ;;  %v167_v28 = vld [vmem:[#allocation8 + $0x68] sm:$0xff]  ;;  %v168_v30 = vld [vmem:[#allocation8 + $0x70] sm:$0xff]  ;;  %v169_v31 = vld [vmem:[#allocation8 + $0x78] sm:$0xff] }
  0x4b   :  { %253 = vmatmul.mubr.msk.f32.vlgmr.msra.gmra.mrb[0].mxu0 %vm76_vm0, %v71_v13  ;;  %v329_v29 = vpack.c.bf16 %v167_v28, %v166_v27  ;;  %v332_v32 = vpack.c.bf16 %v169_v31, %v168_v30  ;;  %v151_v33 = vstv %s69_s3  ;;  %v241_v39 = vstv %s252_s30 }
  0x4c   :  { %315 = vmatpush3.bf16.msra.mxu1 %v314_v14 }
  0x4d   :  { %316 = vmatprep.subr.bf16.mxu1 %v438_v6 }
  0x50   :  { %318 = vmatpush3.bf16.msra.mxu1 %v317_v17 }
  0x51   :  { %319 = vmatprep.subr.bf16.mxu1 %v438_v6 }
  0x54   :  { %321 = vmatpush3.bf16.msra.mxu1 %v320_v20 }
  0x55   :  { %322 = vmatprep.subr.bf16.mxu1 %v438_v6 }
  0x58   :  { %324 = vmatpush3.bf16.msra.mxu1 %v323_v23 }
  0x59   :  { %325 = vmatprep.subr.bf16.mxu1 %v438_v6 }
  0x5c   :  { %327 = vmatpush3.bf16.msra.mxu1 %v326_v26 }
  0x5d   :  { %328 = vmatprep.subr.bf16.mxu1 %v438_v6 }
  0x60   :  { %330 = vmatpush3.bf16.msra.mxu1 %v329_v29 }
  0x61   :  { %331 = vmatprep.subr.bf16.mxu1 %v438_v6 }
  0x64   :  { %333 = vmatpush3.bf16.msra.mxu1 %v332_v32 }
 0x11e   :  { %v146_v34 = vpop.f32.mrb[0].mxu0 }
 0x11f   :  { %v152_v35 = vadd.f32 %v151_v33, %v146_v34  ;;  %v148_v36 = vpop.f32.mrb[1].mxu0 }
 0x121   :  { %v153_v37 = vmax.f32 %v152_v35, 0.0 }
 0x123   :  { %304 = vmatmul.mubr.f32.vlgmr.msra.gmra.mrb[0].mxu1 %v153_v37 }
 0x1f6   :  { %v236_v38 = vpop.f32.mrb[0].mxu1 }
 0x1f7   :  { %v240_v40 = vadd.f32 %v236_v38, %v148_v36  ;;  %v305_v41 = vpop.f32.mrb[1].mxu1 }
 0x1f9   :  { %v242_v42 = vadd.f32 %v241_v39, %v240_v40 }
 0x1fb   :  { %244 = vst.msk [vmem:[%s518_s4] sm:$0xff] %vm243_vm2, %v242_v42 }
 0x1fc   :  { %249 = vsyncpa [#allocation3], 1 }
 0x1fd   :  { %250 = vsyncpa [#allocation7], 1 }
 0x1fe   :  { %251 = vsyncpa [#allocation4], 1 }

</bundles_post_ra>
